<compile_context>
chip_gen: v5e
topology: v5e:2x2
jax: 0.10.0
libtpu: 0.0.40
codegen_flags: <defaults>
</compile_context>

<pallas_src>
import jax
import jax.numpy as jnp
from jax.experimental import pallas as pl
from jax.experimental.pallas import tpu as pltpu


def tile_slots_b_kernel(x_ref, p_ref, o_ref):
    t, b, c = x_ref.shape
    nd = p_ref.shape[0]
    # Top of the output: the data tokens, unchanged.
    o_ref[0:t] = x_ref[...]
    # Bottom: positional encoding broadcast along the batch (sublane) axis.
    o_ref[t:t + nd] = jnp.broadcast_to(p_ref[...], (nd, b, c)).astype(o_ref.dtype)


def tile_slots_b(x, pos_enc):
    """x: (t, b, c); pos_enc: (num_data_tokens, 1, c).

    Returns (t + num_data_tokens, b, c), matching
    torch.cat((x, pos_enc.expand(-1, b, c)), dim=0).
    """
    t, b, c = x.shape
    nd = pos_enc.shape[0]
    out_shape = (t + nd, b, c)

    return pl.pallas_call(
        tile_slots_b_kernel,
        out_shape=jax.ShapeDtypeStruct(out_shape, x.dtype),
        grid=(1,),
        in_specs=[
            pl.BlockSpec((t, b, c), lambda i: (0, 0, 0)),    # x, whole array in VMEM
            pl.BlockSpec((nd, 1, c), lambda i: (0, 0, 0)),   # positional encoding, whole array
        ],
        out_specs=pl.BlockSpec(out_shape, lambda i: (0, 0, 0)),
        compiler_params=pltpu.CompilerParams(
            dimension_semantics=("arbitrary",),
        ),
    )(x, pos_enc)


def reference(x, pos_enc):
    """Pure-JAX reference matching the PyTorch forward."""
    t, b, c = x.shape
    p = jnp.broadcast_to(pos_enc, (pos_enc.shape[0], b, c))
    return jnp.concatenate([x, p], axis=0)


if __name__ == "__main__":
    # config: num_data_tokens=4, channels=32, weight_scalar=0.02; seq t=8, batch b=2
    T, B, C = 8, 2, 32
    ND = 4
    WEIGHT_SCALAR = 0.02

    key = jax.random.PRNGKey(0)
    kx, kp = jax.random.split(key, 2)

    x = jax.random.normal(kx, (T, B, C), dtype=jnp.float32)
    pos_enc = WEIGHT_SCALAR * jax.random.normal(kp, (ND, 1, C), dtype=jnp.float32)

    out = tile_slots_b(x, pos_enc)
    out = jax.block_until_ready(out)

    ref = reference(x, pos_enc)
    assert out.shape == (T + ND, B, C)
    assert jnp.allclose(out, ref), float(jnp.max(jnp.abs(out - ref)))

    print("KERNEL_OK")
</pallas_src>

<mosaic_0001>
module attributes {stable_mosaic.version = 11 : i64} {
  func.func @tile_slots_b_kernel(%arg0: i32, %arg1: memref<8x2x32xf32, #tpu.memory_space<vmem>>, %arg2: memref<4x1x32xf32, #tpu.memory_space<vmem>>, %arg3: memref<12x2x32xf32, #tpu.memory_space<vmem>>) attributes {dimension_semantics = [#tpu.dimension_semantics<arbitrary>], iteration_bounds = array<i64: 1>, scalar_prefetch = 0 : i64, scratch_operands = 0 : i64, tpu.core_type = #tpu.core_type<tc>, window_params = [{pipeline_mode = #tpu.pipeline_mode<synchronous>, transform_indices = @transform_0, window_bounds = array<i64: 8, 2, 32>}, {pipeline_mode = #tpu.pipeline_mode<synchronous>, transform_indices = @transform_1, window_bounds = array<i64: 4, 1, 32>}, {pipeline_mode = #tpu.pipeline_mode<synchronous>, transform_indices = @transform_2, window_bounds = array<i64: 12, 2, 32>}]} {
    %c0 = arith.constant 0 : index
    %c0_0 = arith.constant 0 : index
    %c0_1 = arith.constant 0 : index
    %0 = vector.load %arg1[%c0, %c0_0, %c0_1] : memref<8x2x32xf32, #tpu.memory_space<vmem>>, vector<8x2x32xf32>
    %c0_2 = arith.constant 0 : index
    %c0_3 = arith.constant 0 : index
    %c0_4 = arith.constant 0 : index
    %1 = vector.load %arg3[%c0_2, %c0_3, %c0_4] : memref<12x2x32xf32, #tpu.memory_space<vmem>>, vector<8x2x32xf32>
    tpu.vector_store %arg3[%c0_2, %c0_3, %c0_4], %0 {strides = array<i32>} : memref<12x2x32xf32, #tpu.memory_space<vmem>>, vector<8x2x32xf32>,
    %c0_5 = arith.constant 0 : index
    %c0_6 = arith.constant 0 : index
    %c0_7 = arith.constant 0 : index
    %2 = vector.load %arg2[%c0_5, %c0_6, %c0_7] : memref<4x1x32xf32, #tpu.memory_space<vmem>>, vector<4x1x32xf32>
    %3 = vector.shape_cast %2 : vector<4x1x32xf32> to vector<4x1x32xf32>
    %4 = vector.broadcast %3 : vector<4x1x32xf32> to vector<4x2x32xf32>
    %c8 = arith.constant 8 : index
    %c0_8 = arith.constant 0 : index
    %c0_9 = arith.constant 0 : index
    %5 = vector.load %arg3[%c8, %c0_8, %c0_9] : memref<12x2x32xf32, #tpu.memory_space<vmem>>, vector<4x2x32xf32>
    tpu.vector_store %arg3[%c8, %c0_8, %c0_9], %4 {strides = array<i32>} : memref<12x2x32xf32, #tpu.memory_space<vmem>>, vector<4x2x32xf32>,
    return
  }
  func.func @transform_0(%arg0: i32) -> (i32, i32, i32) {
    %c0_i32 = arith.constant 0 : i32
    %c0_i32_0 = arith.constant 0 : i32
    %c0_i32_1 = arith.constant 0 : i32
    %c0_i32_2 = arith.constant 0 : i32
    return %c0_i32, %c0_i32_0, %c0_i32_1 : i32, i32, i32
  }
  func.func @transform_1(%arg0: i32) -> (i32, i32, i32) {
    %c0_i32 = arith.constant 0 : i32
    %c0_i32_0 = arith.constant 0 : i32
    %c0_i32_1 = arith.constant 0 : i32
    %c0_i32_2 = arith.constant 0 : i32
    return %c0_i32, %c0_i32_0, %c0_i32_1 : i32, i32, i32
  }
  func.func @transform_2(%arg0: i32) -> (i32, i32, i32) {
    %c0_i32 = arith.constant 0 : i32
    %c0_i32_0 = arith.constant 0 : i32
    %c0_i32_1 = arith.constant 0 : i32
    %c0_i32_2 = arith.constant 0 : i32
    return %c0_i32, %c0_i32_0, %c0_i32_1 : i32, i32, i32
  }
}

</mosaic_0001>

<bundles_post_ra>
// kernel: tpu_custom_call.1
= control target key start
LH: loop header
LB: loop body
LE: loop exit
PB: predicated region body
PF: predicated region fallthrough
CT: control target
= control target key end

     0   :  { %7 = vsyncpa [#allocation3], 0  ;;  %s240_s0 = inlined_call_operand.hbm [shape: f32[8,2,32], index: 0, kind: input, shape index: {}]   ;;  %s241_s1 = inlined_call_operand.hbm [shape: f32[4,1,32], index: 1, kind: input, shape index: {}]   ;;  %s242_s2 = inlined_call_operand.hbm [shape: f32[12,2,32], index: 2, kind: output, shape index: {}]  }
   0x1   :  { %8 = vsyncpa [#allocation6], 0 }
   0x2   :  { %9 = vsyncpa [#allocation4], 0  ;;  %s14_s11 = sshll.u32 %s240_s0, 4  ;;  %s191_s12 = smov [#allocation2]   ;;  %s15_s11 = int_to_ptr.hbm [resolvable:$true] %s14_s11 }
   0x3   :  { %s16_s13 = sshll.u32 %s191_s12, 4  ;;  %s27_s16 = sshll.u32 %s241_s1, 4  ;;  %s17_s13 = int_to_ptr.vmem [resolvable:$true] %s16_s13  ;;  %s28_s16 = int_to_ptr.hbm [resolvable:$true] %s27_s16 }
   0x4   :  { %s192_s17 = smov 32   ;;  %s193_s18 = smov 2  }
   0x5   :  { %22 = dma.hbm_to_vmem [thread:$0]  %s15_s11, 256, %s17_s13, [#allocation3], %s192_s17, %s192_s17, %s193_s18  }
   0x6   :  { %s194_s19 = smov [#allocation5]   ;;  %s195_s21 = smov 16  }
   0x7   :  { %s29_s20 = sshll.u32 %s194_s19, 4  ;;  %s196_s0 = smov 1   ;;  %s30_s20 = int_to_ptr.vmem [resolvable:$true] %s29_s20 }
   0x8   :  { %35 = dma.hbm_to_vmem [thread:$0]  %s28_s16, 64, %s30_s20, [#allocation6], %s195_s21, %s195_s21, %s196_s0  }
   0x9   :  { %185 = dma.done.wait [#allocation3], 256  }
   0xa   :  { %186 = vsyncadd [#allocation3], 4294967040 }
   0xb   :  { %187 = dma.done.wait [#allocation6], 64  }
   0xc   :  { %188 = vsyncadd [#allocation6], 4294967232  ;;  %vm52_vm0 = vcmask 254976   ;;  %v44_v0 = vld [vmem:[#allocation2] sm:$0x3]  ;;  %s197_s1 = smov [#allocation7]  }
   0xd   :  { %v45_v1 = vld [vmem:[#allocation2 + $0x2] sm:$0x3]  ;;  %v46_v2 = vld [vmem:[#allocation2 + $0x4] sm:$0x3]  ;;  %53 = vst.msk [vmem:[#allocation7] sm:$0x3] %vm52_vm0, %v44_v0 }
   0xe   :  { %v47_v3 = vld [vmem:[#allocation2 + $0x6] sm:$0x3]  ;;  %54 = vst.msk [vmem:[#allocation7 + $0x2] sm:$0x3] %vm52_vm0, %v45_v1  ;;  %v48_v4 = vld [vmem:[#allocation2 + $0x8] sm:$0x3] }
   0xf   :  { %v49_v5 = vld [vmem:[#allocation2 + $0xa] sm:$0x3]  ;;  %55 = vst.msk [vmem:[#allocation7 + $0x4] sm:$0x3] %vm52_vm0, %v46_v2  ;;  %v50_v6 = vld [vmem:[#allocation2 + $0xc] sm:$0x3] }
  0x10   :  { %56 = vst.msk [vmem:[#allocation7 + $0x6] sm:$0x3] %vm52_vm0, %v47_v3  ;;  %v51_v7 = vld [vmem:[#allocation2 + $0xe] sm:$0x3]  ;;  %v109_v8 = vld [vmem:[#allocation5] ss:$0 sm:$0xff] }
  0x11   :  { %57 = vst.msk [vmem:[#allocation7 + $0x8] sm:$0x3] %vm52_vm0, %v48_v4  ;;  %v110_v9 = vld [vmem:[#allocation5 + $0x1] ss:$0 sm:$0xff]  ;;  %v111_v10 = vld [vmem:[#allocation5 + $0x2] ss:$0 sm:$0xff] }
  0x12   :  { %58 = vst.msk [vmem:[#allocation7 + $0xa] sm:$0x3] %vm52_vm0, %v49_v5  ;;  %s86_s22 = sshll.u32 %s197_s1, 4  ;;  %s88_s25 = sshll.u32 %s242_s2, 4  ;;  %v112_v11 = vld [vmem:[#allocation5 + $0x3] ss:$0 sm:$0xff]  ;;  %s87_s22 = int_to_ptr.vmem [resolvable:$true] %s86_s22  ;;  %s89_s25 = int_to_ptr.hbm [resolvable:$true] %s88_s25 }
  0x13   :  { %59 = vst.msk [vmem:[#allocation7 + $0xc] sm:$0x3] %vm52_vm0, %v50_v6 }
  0x14   :  { %60 = vst.msk [vmem:[#allocation7 + $0xe] sm:$0x3] %vm52_vm0, %v51_v7 }
  0x15   :  { %78 = vst.msk [vmem:[#allocation7 + $0x10] sm:$0x3] %vm52_vm0, %v109_v8 }
  0x16   :  { %79 = vst.msk [vmem:[#allocation7 + $0x12] sm:$0x3] %vm52_vm0, %v110_v9 }
  0x17   :  { %80 = vst.msk [vmem:[#allocation7 + $0x14] sm:$0x3] %vm52_vm0, %v111_v10 }
  0x18   :  { %81 = vst.msk [vmem:[#allocation7 + $0x16] sm:$0x3] %vm52_vm0, %v112_v11 }
  0x19   :  { %94 = dma.vmem_to_hbm [thread:$0]  %s87_s22, 384, %s89_s25, [#allocation4], %s192_s17, %s192_s17, %s193_s18  }
  0x1a   :  { %189 = dma.done.wait [#allocation4], 384  }
  0x1b   :  { %190 = vsyncadd [#allocation4], 4294966912 }
  0x1c   :  { %99 = vsyncpa [#allocation3], 1 }
  0x1d   :  { %100 = vsyncpa [#allocation6], 1 }
  0x1e   :  { %101 = vsyncpa [#allocation4], 1 }

</bundles_post_ra>
